<compile_context>
chip_gen: v6e
topology: v6e:2x2x1
jax: 0.10.0
libtpu: 0.0.40
codegen_flags: <defaults>
</compile_context>

<pallas_src>
from functools import partial

import numpy as np
import jax
import jax.numpy as jnp
from jax.experimental import pallas as pl
from jax.experimental.pallas import tpu as pltpu

NEG_SLOPE = 0.01  # F.leaky_relu default


def _round_up(x, m):
    return ((x + m - 1) // m) * m


def _cdiv(a, b):
    return (a + b - 1) // b


def _leaky_relu(x):
    # max(x, 0.01*x): 2 VALU ops/elem instead of compare+select (3).
    return jnp.maximum(x, NEG_SLOPE * x)


def critic_kernel(state_ref, action_ref,
                  w1_ref, b1_ref,
                  w2_ref, b2_ref,
                  w3_ref, b3_ref,
                  w4r_ref, b4_ref,
                  out_ref):
    bf16 = jnp.bfloat16

    # fc1 + leaky_relu (MXU, bf16 in / f32 acc)
    xs = _leaky_relu(
        jnp.dot(state_ref[...].astype(bf16), w1_ref[...],
                preferred_element_type=jnp.float32)
        + b1_ref[...])

    # fc2 on concat([xs, action]).  xs is fc1_units = 128 lanes wide, so the
    # concat boundary sits exactly at lane 128 -> lane-tile-aligned concat,
    # and fc2 is a single MXU pass with K = 128 + A using the unsplit W2.
    x2 = jnp.concatenate([xs, action_ref[...]], axis=-1).astype(bf16)
    h2 = _leaky_relu(
        jnp.dot(x2, w2_ref[...], preferred_element_type=jnp.float32)
        + b2_ref[...])

    # fc3 + leaky_relu (MXU)
    h3 = _leaky_relu(
        jnp.dot(h2.astype(bf16), w3_ref[...],
                preferred_element_type=jnp.float32)
        + b3_ref[...])

    # fc4 (N=1): VPU multiply + XLU lane-reduce instead of a 1-wide matmul.
    # TODO(synk): output last-dim=1 still forces masked partial stores; a
    # lane-dense (tiles, TB) output layout would only matter at very large B.
    out_ref[...] = (jnp.sum(h3 * w4r_ref[...], axis=-1, keepdims=True)
                    + b4_ref[...])


@partial(jax.jit, static_argnames=("block_b",))
def _critic_forward(state, action, prepped, *, block_b):
    B, S = state.shape
    A = action.shape[1]

    # Batch tile: as large as block_b allows, but never more than ceil(B/2)
    # (so the grid has >= 2 steps and v7x can shard the batch over both
    # TensorCores), and always a multiple of 8 sublanes.
    TB = min(_round_up(block_b, 8), _round_up(_cdiv(B, 2), 8))
    TB = max(8, TB)
    grid = (_cdiv(B, TB),)   # ragged last block handled by Pallas masking

    # Explicit scoped-VMEM budget (double-buffered in/out blocks + resident
    # weights + kernel-local f32 temporaries, 2x headroom).  Keeps large tiles
    # from tripping v5e's 16 MiB default scoped limit; capped at 64 MiB so it
    # also fits v7x physical VMEM.
    est = (2 * 2 * TB * (S + A + 1) * 4          # double-buffered in/out blocks
           + 8 * TB * (128 + A + 8) * 4          # kernel-local intermediates
           + (S + 2 * 128 + A + 8) * 128 * 4)    # resident weights + biases
    vmem_limit = max(32 * 1024 * 1024, min(2 * est, 64 * 1024 * 1024))

    weight_specs = [pl.BlockSpec(p.shape, lambda i: (0, 0)) for p in prepped]
    in_specs = ([pl.BlockSpec((TB, S), lambda i: (i, 0)),
                 pl.BlockSpec((TB, A), lambda i: (i, 0))]
                + weight_specs)
    out_specs = pl.BlockSpec((TB, 1), lambda i: (i, 0))

    # TODO(synk): if the producer can emit bf16 state/action, pass them bf16
    # and drop the in-kernel cast (halves input DMA bytes; matters only when
    # the kernel becomes HBM-streaming bound on v5e).
    return pl.pallas_call(
        critic_kernel,
        out_shape=jax.ShapeDtypeStruct((B, 1), jnp.float32),
        grid=grid,
        in_specs=in_specs,
        out_specs=out_specs,
        compiler_params=pltpu.CompilerParams(
            dimension_semantics=("parallel",),
            vmem_limit_bytes=int(vmem_limit)),
    )(state, action, *prepped)


def critic_forward(state, action, prepped, *, block_b=2048):
    """Run the Critic forward pass. `prepped` comes from prepare_critic_params."""
    B = state.shape[0]
    if B < 8:  # micro-batch: pad to one full sublane group (negligible cost)
        pad = 8 - B
        state = jnp.pad(state, ((0, pad), (0, 0)))
        action = jnp.pad(action, ((0, pad), (0, 0)))
        return _critic_forward(state, action, prepped, block_b=block_b)[:B]
    return _critic_forward(state, action, prepped, block_b=block_b)


def prepare_critic_params(params):
    """One-time param prep: reshape biases to rows, cast MXU weights to bf16.

    Keeps the per-call wrapper free of slices/reshapes/casts.  Note: bf16
    weight quantization means ~1e-2 relative deviation vs the f32 reference.
    """
    (w1, b1, w2, b2, w3, b3, w4, b4) = params
    return (
        w1.astype(jnp.bfloat16),                 # (S, 128)
        b1.reshape(1, -1).astype(jnp.float32),
        w2.astype(jnp.bfloat16),                 # (128 + A, 128), unsplit
        b2.reshape(1, -1).astype(jnp.float32),
        w3.astype(jnp.bfloat16),                 # (128, 128)
        b3.reshape(1, -1).astype(jnp.float32),
        w4.reshape(1, -1).astype(jnp.float32),   # (1, 128) row for VPU reduce
        b4.reshape(1, 1).astype(jnp.float32),
    )


def init_critic_params(key, state_size, action_size,
                       fc1_units=128, fc2_units=128, fc3_units=128, fc4_units=128):
    """Init mirroring nn.Linear default U(-1/sqrt(fan_in), 1/sqrt(fan_in)).

    Weights stored transposed vs PyTorch (in_features, out_features) so the
    kernel computes x @ W directly.
    """
    keys = jax.random.split(key, 8)

    def linear(kw, kb, fan_in, fan_out):
        lim = 1.0 / np.sqrt(fan_in)
        w = jax.random.uniform(kw, (fan_in, fan_out), jnp.float32, -lim, lim)
        b = jax.random.uniform(kb, (fan_out,), jnp.float32, -lim, lim)
        return w, b

    w1, b1 = linear(keys[0], keys[1], state_size, fc1_units)
    w2, b2 = linear(keys[2], keys[3], fc2_units + action_size, fc2_units)
    w3, b3 = linear(keys[4], keys[5], fc3_units, fc4_units)
    w4, b4 = linear(keys[6], keys[7], fc4_units, 1)
    return (w1, b1, w2, b2, w3, b3, w4, b4)


def critic_reference_f32(state, action, params):
    """Pure-JAX f32 reference replicating the PyTorch forward exactly."""
    (w1, b1, w2, b2, w3, b3, w4, b4) = params
    xs = jax.nn.leaky_relu(state @ w1 + b1, NEG_SLOPE)
    x = jnp.concatenate([xs, action], axis=1)
    x = jax.nn.leaky_relu(x @ w2 + b2, NEG_SLOPE)
    x = jax.nn.leaky_relu(x @ w3 + b3, NEG_SLOPE)
    return x @ w4 + b4


def critic_reference_prepared(state, action, prepped):
    """Reference that mirrors the kernel's bf16-matmul / f32-accumulate math."""
    (w1, b1, w2, b2, w3, b3, w4r, b4) = prepped
    bf16 = jnp.bfloat16

    def bdot(a, b):
        return jnp.dot(a.astype(bf16), b, preferred_element_type=jnp.float32)

    xs = jax.nn.leaky_relu(bdot(state, w1) + b1, NEG_SLOPE)
    x2 = jnp.concatenate([xs, action], axis=-1)
    h2 = jax.nn.leaky_relu(bdot(x2, w2) + b2, NEG_SLOPE)
    h3 = jax.nn.leaky_relu(bdot(h2, w3) + b3, NEG_SLOPE)
    return jnp.sum(h3 * w4r, axis=-1, keepdims=True) + b4


if __name__ == "__main__":
    # Small, deterministic example.  With the default block_b, B=100 gives
    # TB=56 and grid=(2,), which exercises both the multi-step grid (megacore
    # path) and the ragged, masked last block (rows 100..111 never stored).
    B, state_size, action_size = 100, 32, 4

    key = jax.random.PRNGKey(0)
    k_state, k_action, k_params = jax.random.split(key, 3)

    state = jax.random.normal(k_state, (B, state_size), jnp.float32)
    action = jax.random.normal(k_action, (B, action_size), jnp.float32)
    params = init_critic_params(k_params, state_size, action_size)
    prepped = prepare_critic_params(params)

    out = critic_forward(state, action, prepped)
    out = jax.block_until_ready(out)
    assert out.shape == (B, 1)

    # Tight check vs a reference using the same bf16/f32 arithmetic as the kernel.
    ref_k = critic_reference_prepared(state, action, prepped)
    np.testing.assert_allclose(np.asarray(out), np.asarray(ref_k),
                               rtol=1e-3, atol=1e-3)

    # Looser check vs the exact f32 PyTorch-semantics reference (bf16 weight
    # quantization is the only difference).
    ref_f = critic_reference_f32(state, action, params)
    np.testing.assert_allclose(np.asarray(out), np.asarray(ref_f),
                               rtol=5e-2, atol=5e-2)

    print("KERNEL_OK")
</pallas_src>

<mosaic_0001>
module attributes {stable_mosaic.version = 11 : i64} {
  func.func @critic_kernel(%arg0: i32, %arg1: memref<56x32xf32, #tpu.memory_space<vmem>>, %arg2: memref<56x4xf32, #tpu.memory_space<vmem>>, %arg3: memref<32x128xbf16, #tpu.memory_space<vmem>>, %arg4: memref<1x128xf32, #tpu.memory_space<vmem>>, %arg5: memref<132x128xbf16, #tpu.memory_space<vmem>>, %arg6: memref<1x128xf32, #tpu.memory_space<vmem>>, %arg7: memref<128x128xbf16, #tpu.memory_space<vmem>>, %arg8: memref<1x128xf32, #tpu.memory_space<vmem>>, %arg9: memref<1x128xf32, #tpu.memory_space<vmem>>, %arg10: memref<1x1xf32, #tpu.memory_space<vmem>>, %arg11: memref<56x1xf32, #tpu.memory_space<vmem>>) attributes {dimension_semantics = [#tpu.dimension_semantics<parallel>], iteration_bounds = array<i64: 2>, scalar_prefetch = 0 : i64, scratch_operands = 0 : i64, tpu.core_type = #tpu.core_type<tc>, window_params = [{transform_indices = @transform_0, window_bounds = array<i64: 56, 32>}, {transform_indices = @transform_1, window_bounds = array<i64: 56, 4>}, {pipeline_mode = #tpu.pipeline_mode<synchronous>, transform_indices = @transform_2, window_bounds = array<i64: 32, 128>}, {pipeline_mode = #tpu.pipeline_mode<synchronous>, transform_indices = @transform_3, window_bounds = array<i64: 1, 128>}, {pipeline_mode = #tpu.pipeline_mode<synchronous>, transform_indices = @transform_4, window_bounds = array<i64: 132, 128>}, {pipeline_mode = #tpu.pipeline_mode<synchronous>, transform_indices = @transform_5, window_bounds = array<i64: 1, 128>}, {pipeline_mode = #tpu.pipeline_mode<synchronous>, transform_indices = @transform_6, window_bounds = array<i64: 128, 128>}, {pipeline_mode = #tpu.pipeline_mode<synchronous>, transform_indices = @transform_7, window_bounds = array<i64: 1, 128>}, {pipeline_mode = #tpu.pipeline_mode<synchronous>, transform_indices = @transform_8, window_bounds = array<i64: 1, 128>}, {pipeline_mode = #tpu.pipeline_mode<synchronous>, transform_indices = @transform_9, window_bounds = array<i64: 1, 1>}, {transform_indices = @transform_10, window_bounds = array<i64: 56, 1>}]} {
    %c0 = arith.constant 0 : index
    %c0_0 = arith.constant 0 : index
    %0 = vector.load %arg1[%c0, %c0_0] : memref<56x32xf32, #tpu.memory_space<vmem>>, vector<56x32xf32>
    %1 = arith.truncf %0 : vector<56x32xf32> to vector<56x32xbf16>
    %c0_1 = arith.constant 0 : index
    %c0_2 = arith.constant 0 : index
    %2 = vector.load %arg3[%c0_1, %c0_2] : memref<32x128xbf16, #tpu.memory_space<vmem>>, vector<32x128xbf16>
    %cst = arith.constant dense<0.000000e+00> : vector<56x128xf32>
    %3 = tpu.matmul %1, %2, %cst {dimension_numbers = #tpu.dot_dimension_numbers<[1], [0], [0], [1], [0, 0, 1, 1], [], []>} : vector<56x32xbf16>, vector<32x128xbf16>, vector<56x128xf32> -> vector<56x128xf32>
    %c0_3 = arith.constant 0 : index
    %c0_4 = arith.constant 0 : index
    %4 = vector.load %arg4[%c0_3, %c0_4] : memref<1x128xf32, #tpu.memory_space<vmem>>, vector<1x128xf32>
    %5 = vector.broadcast %4 : vector<1x128xf32> to vector<56x128xf32>
    %6 = arith.addf %3, %5 : vector<56x128xf32>
    %cst_5 = arith.constant 0.00999999977 : f32
    %7 = vector.broadcast %cst_5 : f32 to vector<56x128xf32>
    %8 = arith.mulf %7, %6 : vector<56x128xf32>
    %9 = arith.maximumf %6, %8 : vector<56x128xf32>
    %c0_6 = arith.constant 0 : index
    %c0_7 = arith.constant 0 : index
    %10 = vector.load %arg2[%c0_6, %c0_7] : memref<56x4xf32, #tpu.memory_space<vmem>>, vector<56x4xf32>
    %11 = tpu.concatenate %9, %10 in 1 : vector<56x128xf32>, vector<56x4xf32> -> vector<56x132xf32>
    %12 = arith.truncf %11 : vector<56x132xf32> to vector<56x132xbf16>
    %c0_8 = arith.constant 0 : index
    %c0_9 = arith.constant 0 : index
    %13 = vector.load %arg5[%c0_8, %c0_9] : memref<132x128xbf16, #tpu.memory_space<vmem>>, vector<132x128xbf16>
    %cst_10 = arith.constant dense<0.000000e+00> : vector<56x128xf32>
    %14 = tpu.matmul %12, %13, %cst_10 {dimension_numbers = #tpu.dot_dimension_numbers<[1], [0], [0], [1], [0, 0, 1, 1], [], []>} : vector<56x132xbf16>, vector<132x128xbf16>, vector<56x128xf32> -> vector<56x128xf32>
    %c0_11 = arith.constant 0 : index
    %c0_12 = arith.constant 0 : index
    %15 = vector.load %arg6[%c0_11, %c0_12] : memref<1x128xf32, #tpu.memory_space<vmem>>, vector<1x128xf32>
    %16 = vector.broadcast %15 : vector<1x128xf32> to vector<56x128xf32>
    %17 = arith.addf %14, %16 : vector<56x128xf32>
    %cst_13 = arith.constant 0.00999999977 : f32
    %18 = vector.broadcast %cst_13 : f32 to vector<56x128xf32>
    %19 = arith.mulf %18, %17 : vector<56x128xf32>
    %20 = arith.maximumf %17, %19 : vector<56x128xf32>
    %21 = arith.truncf %20 : vector<56x128xf32> to vector<56x128xbf16>
    %c0_14 = arith.constant 0 : index
    %c0_15 = arith.constant 0 : index
    %22 = vector.load %arg7[%c0_14, %c0_15] : memref<128x128xbf16, #tpu.memory_space<vmem>>, vector<128x128xbf16>
    %cst_16 = arith.constant dense<0.000000e+00> : vector<56x128xf32>
    %23 = tpu.matmul %21, %22, %cst_16 {dimension_numbers = #tpu.dot_dimension_numbers<[1], [0], [0], [1], [0, 0, 1, 1], [], []>} : vector<56x128xbf16>, vector<128x128xbf16>, vector<56x128xf32> -> vector<56x128xf32>
    %c0_17 = arith.constant 0 : index
    %c0_18 = arith.constant 0 : index
    %24 = vector.load %arg8[%c0_17, %c0_18] : memref<1x128xf32, #tpu.memory_space<vmem>>, vector<1x128xf32>
    %25 = vector.broadcast %24 : vector<1x128xf32> to vector<56x128xf32>
    %26 = arith.addf %23, %25 : vector<56x128xf32>
    %cst_19 = arith.constant 0.00999999977 : f32
    %27 = vector.broadcast %cst_19 : f32 to vector<56x128xf32>
    %28 = arith.mulf %27, %26 : vector<56x128xf32>
    %29 = arith.maximumf %26, %28 : vector<56x128xf32>
    %c0_20 = arith.constant 0 : index
    %c0_21 = arith.constant 0 : index
    %30 = vector.load %arg9[%c0_20, %c0_21] : memref<1x128xf32, #tpu.memory_space<vmem>>, vector<1x128xf32>
    %31 = vector.broadcast %30 : vector<1x128xf32> to vector<56x128xf32>
    %32 = arith.mulf %29, %31 : vector<56x128xf32>
    %cst_22 = arith.constant dense<0.000000e+00> : vector<56xf32>
    %33 = vector.multi_reduction <add>, %32, %cst_22 [1] : vector<56x128xf32> to vector<56xf32>
    %34 = vector.shape_cast %33 : vector<56xf32> to vector<56x1xf32>
    %c0_23 = arith.constant 0 : index
    %c0_24 = arith.constant 0 : index
    %35 = vector.load %arg10[%c0_23, %c0_24] : memref<1x1xf32, #tpu.memory_space<vmem>>, vector<1x1xf32>
    %36 = vector.broadcast %35 : vector<1x1xf32> to vector<56x1xf32>
    %37 = arith.addf %34, %36 : vector<56x1xf32>
    %c0_25 = arith.constant 0 : index
    %c0_26 = arith.constant 0 : index
    %38 = vector.load %arg11[%c0_25, %c0_26] : memref<56x1xf32, #tpu.memory_space<vmem>>, vector<56x1xf32>
    tpu.vector_store %arg11[%c0_25, %c0_26], %37 {strides = array<i32>} : memref<56x1xf32, #tpu.memory_space<vmem>>, vector<56x1xf32>,
    return
  }
  func.func @transform_0(%arg0: i32) -> (i32, i32) {
    %c0_i32 = arith.constant 0 : i32
    %c0_i32_0 = arith.constant 0 : i32
    return %arg0, %c0_i32 : i32, i32
  }
  func.func @transform_1(%arg0: i32) -> (i32, i32) {
    %c0_i32 = arith.constant 0 : i32
    %c0_i32_0 = arith.constant 0 : i32
    return %arg0, %c0_i32 : i32, i32
  }
  func.func @transform_2(%arg0: i32) -> (i32, i32) {
    %c0_i32 = arith.constant 0 : i32
    %c0_i32_0 = arith.constant 0 : i32
    %c0_i32_1 = arith.constant 0 : i32
    return %c0_i32, %c0_i32_0 : i32, i32
  }
  func.func @transform_3(%arg0: i32) -> (i32, i32) {
    %c0_i32 = arith.constant 0 : i32
    %c0_i32_0 = arith.constant 0 : i32
    %c0_i32_1 = arith.constant 0 : i32
    return %c0_i32, %c0_i32_0 : i32, i32
  }
  func.func @transform_4(%arg0: i32) -> (i32, i32) {
    %c0_i32 = arith.constant 0 : i32
    %c0_i32_0 = arith.constant 0 : i32
    %c0_i32_1 = arith.constant 0 : i32
    return %c0_i32, %c0_i32_0 : i32, i32
  }
  func.func @transform_5(%arg0: i32) -> (i32, i32) {
    %c0_i32 = arith.constant 0 : i32
    %c0_i32_0 = arith.constant 0 : i32
    %c0_i32_1 = arith.constant 0 : i32
    return %c0_i32, %c0_i32_0 : i32, i32
  }
  func.func @transform_6(%arg0: i32) -> (i32, i32) {
    %c0_i32 = arith.constant 0 : i32
    %c0_i32_0 = arith.constant 0 : i32
    %c0_i32_1 = arith.constant 0 : i32
    return %c0_i32, %c0_i32_0 : i32, i32
  }
  func.func @transform_7(%arg0: i32) -> (i32, i32) {
    %c0_i32 = arith.constant 0 : i32
    %c0_i32_0 = arith.constant 0 : i32
    %c0_i32_1 = arith.constant 0 : i32
    return %c0_i32, %c0_i32_0 : i32, i32
  }
  func.func @transform_8(%arg0: i32) -> (i32, i32) {
    %c0_i32 = arith.constant 0 : i32
    %c0_i32_0 = arith.constant 0 : i32
    %c0_i32_1 = arith.constant 0 : i32
    return %c0_i32, %c0_i32_0 : i32, i32
  }
  func.func @transform_9(%arg0: i32) -> (i32, i32) {
    %c0_i32 = arith.constant 0 : i32
    %c0_i32_0 = arith.constant 0 : i32
    %c0_i32_1 = arith.constant 0 : i32
    return %c0_i32, %c0_i32_0 : i32, i32
  }
  func.func @transform_10(%arg0: i32) -> (i32, i32) {
    %c0_i32 = arith.constant 0 : i32
    %c0_i32_0 = arith.constant 0 : i32
    return %arg0, %c0_i32 : i32, i32
  }
}

</mosaic_0001>

<bundles_post_ra>
// kernel: _critic_forward.1
= control target key start
LH: loop header
LB: loop body
LE: loop exit
PB: predicated region body
PF: predicated region fallthrough
CT: control target
= control target key end

     0   :  { %s1765_s0 = inlined_call_operand.vmem [shape: f32[100,32], index: 0, kind: input, shape index: {}]   ;;  %s1766_s1 = inlined_call_operand.vmem [shape: f32[100,4], index: 1, kind: input, shape index: {}]   ;;  %s1767_s2 = inlined_call_operand.vmem [shape: bf16[32,128], index: 2, kind: input, shape index: {}]   ;;  %s1768_s3 = inlined_call_operand.vmem [shape: f32[1,128], index: 3, kind: input, shape index: {}]   ;;  %s1769_s4 = inlined_call_operand.vmem [shape: bf16[132,128], index: 4, kind: input, shape index: {}]   ;;  %s1770_s5 = inlined_call_operand.vmem [shape: f32[1,128], index: 5, kind: input, shape index: {}]   ;;  %s1771_s6 = inlined_call_operand.vmem [shape: bf16[128,128], index: 6, kind: input, shape index: {}]   ;;  %s1772_s7 = inlined_call_operand.vmem [shape: f32[1,128], index: 7, kind: input, shape index: {}]   ;;  %s1773_s8 = inlined_call_operand.vmem [shape: f32[1,128], index: 8, kind: input, shape index: {}]   ;;  %s1774_s9 = inlined_call_operand.<no memory space> [shape: f32[1,1], index: 9, kind: input, shape index: {}]   ;;  %s1775_s10 = inlined_call_operand.vmem [shape: f32[100,1], index: 10, kind: output, shape index: {}]  }
   0x1   :  { %v15_v0 = vstv %s1774_s9 }
   0x2   :  { %16 = vst [vmem:[#allocation2] sm:$0x1] %v15_v0 }
   0x3   :  { %s1559_s15 = smov 0   ;;  %s1561_s16 = smov 0  }
   0x4   :  { %s1563_s17 = smov 0  }
   0x5 LB: > { %s1572_s9 = sadd.s32 4294967295, %s1466_s17   ;;  %s1574_s18 = sadd.s32 1, %s1466_s17   ;;  %s1466_s17 = sphi %s1563_s17, %s1782_s17   ;;  %s1462_s16 = sphi %s1561_s16, %s1781_s16   ;;  %s1458_s15 = sphi %s1559_s15, %s1780_s15  }
   0x6   : > { %s246_s19 = ssub.s32 %s1466_s17, %s1574_s18  ;;  %s249_s20 = sadd.s32 1, %s1462_s16 }
   0x7   : > { %p247_p0 = scmp.eq.s32.totalorder %s246_s19, 0  ;;  %p259_p1 = scmp.ne.s32.totalorder %s1462_s16, %s1458_s15 }
   0x8   : > { %p260_p2 = scmp.eq.s32.totalorder %s1572_s9, 1  ;;  %p1196_p3 = scmp.ge.s32.totalorder %s1466_s17, 1 }
   0x9   : > { %s1582_s21 = scalar_select %p247_p0, %s1462_s16, %s249_s20  }
   0xa   : > { %p1584_p4 = por %p260_p2, %p259_p1  ;;  %p342_p5 = scmp.lt.s32.totalorder %s1466_s17, 3 }
   0xc   : > { %p343_p6 = pnand %p1196_p3, %p342_p5 }
   0xd   : > { %s1592_s25 = smul.u32 (!%p343_p6), 7, %s1572_s9  ;;  %s389_s23 = sand.u32 (!%p343_p6), 1, %s1458_s15  }
   0xe   : > { %346 = sbr.rel (%p343_p6) target bundleno = 861 (0x35d), region = 60 }
   0xf   : > { %p397_p7 = scmp.lt.s32.totalorder (!%p343_p6), %s1592_s25, 12  ;;  %s1298_s24 = smul.u32 (!%p343_p6), 56, %s389_s23 }
  0x11   : > { %s1693_s26 = scalar_lea.vmem (!%p343_p6), [#allocation3], %s1298_s24  }
  0x13   : > { %v1389_v1 = vld [vmem:[%s1767_s2 + $0x8] sm:$0xff]   ;;  %v1390_v2 = vld [vmem:[%s1767_s2] sm:$0xff]   ;;  %v1500_v3 = vmov 0   ;;  %v1391_v4 = vld [vmem:[%s1769_s4 + $0x38] sm:$0xff]   ;;  %s1602_s30 = scalar_select %p397_p7, %s1592_s25, 12  ;;  %vm460_vm0 = vcmask 261120  }
  0x14   : > { %1262 = vmatprep.subr.bf16.mxu0 %v1389_v1  ;;  %658 = vmatprep.subr.bf16.mxu1 %v1500_v3  ;;  %v1392_v5 = vld [vmem:[%s1769_s4 + $0x30] sm:$0xff]   ;;  %v1393_v6 = vld [vmem:[%s1769_s4 + $0x28] sm:$0xff]   ;;  %v1394_v17 = vld [vmem:[%s1769_s4 + $0x20] sm:$0xff]   ;;  %vm654_vm1 = vcmask 1041408   ;;  %vm641_vm2 = vcmask 31744   ;;  %vm931_vm3 = vcmask 7168  }
  0x15   : > { %1263 = vmatpush3.bf16.msra.mxu0 %v1389_v1  ;;  %659 = vmatpush1.bf16.msra.mxu1 %v1391_v4  ;;  %s1197_s13 = sshll.u32 %s1602_s30, 3  ;;  %v1395_v19 = vld [vmem:[%s1769_s4 + $0x18] sm:$0xff]   ;;  %v1396_v20 = vld [vmem:[%s1769_s4 + $0x10] sm:$0xff]   ;;  %v1397_v21 = vld [vmem:[%s1769_s4 + $0x8] sm:$0xff]   ;;  %s947_s15 = ssub.s32 (%p1584_p4), 13, %s1592_s25 }
  0x16   : > { %1264 = vmatprep.subr.bf16.mxu0 %v1390_v2  ;;  %660 = vmatprep.subr.bf16.mxu1 %v1500_v3  ;;  %s400_s19 = scalar_lea.vmem %s1765_s0, %s1197_s13  ;;  %v1398_v22 = vld [vmem:[%s1769_s4] sm:$0xff]   ;;  %s1643_s27 = scalar_lea.vmem %s1766_s1, %s1197_s13  ;;  %v1400_v28 = vld [vmem:[%s1771_s6 + $0x38] sm:$0xff]   ;;  %v1401_v29 = vld [vmem:[%s1771_s6 + $0x30] sm:$0xff]  }
  0x17   : > { %v426_v7 = vld [vmem:[%s400_s19] sm:$0xff]  ;;  %v427_v8 = vld [vmem:[%s400_s19 + $0x8] sm:$0xff]  ;;  %v428_v9 = vld [vmem:[%s400_s19 + $0x10] sm:$0xff]  ;;  %p948_p8 = scmp.lt.s32.totalorder (%p1584_p4), %s947_s15, 7 }
  0x18   : > { %v433_v10 = vpack.c.bf16 %v427_v8, %v426_v7  ;;  %v429_v11 = vld [vmem:[%s400_s19 + $0x18] sm:$0xff]  ;;  %v430_v12 = vld [vmem:[%s400_s19 + $0x20] sm:$0xff]  ;;  %v431_v13 = vld [vmem:[%s400_s19 + $0x28] sm:$0xff] }
  0x19   : > { %1265 = vmatpush3.bf16.msra.mxu0 %v1390_v2  ;;  %661 = vmatpush1.bf16.msra.mxu1 %v1392_v5  ;;  %v434_v14 = vpack.c.bf16 %v429_v11, %v428_v9  ;;  %v435_v15 = vpack.c.bf16 %v431_v13, %v430_v12  ;;  %v432_v16 = vld [vmem:[%s400_s19 + $0x30] sm:$0xff]  ;;  %v1399_v23 = vld [vmem:[%s1769_s4 + $0x40] ss:$0 sps:$4 sm:$0x33]   ;;  %v552_v26 = vld [vmem:[%s1643_s27 + $0x8] sm:$0xff] }
  0x1a   : > { %662 = vmatprep.subr.bf16.mxu1 %v1500_v3  ;;  %1266 = vmatprep.mubr.msk.bf16.mxu0 %vm460_vm0, %v433_v10  ;;  %v436_v18 = vpack.c.bf16 %v432_v16, %v432_v16  ;;  %v656_v24 = vsel %vm654_vm1, %v1399_v23, 0  ;;  %v551_v25 = vld [vmem:[%s1643_s27] sm:$0xff]  ;;  %v1402_v30 = vld [vmem:[%s1771_s6 + $0x28] sm:$0xff]   ;;  %v553_v42 = vld [vmem:[%s1643_s27 + $0x10] sm:$0xff] }
  0x1b   : > { %v559_v27 = vpack.c.bf16 %v552_v26, %v551_v25  ;;  %1274 = vmatprep.subr.bf16.mxu0 %v1400_v28  ;;  %v1199_v32 = vld [vmem:[%s1768_s3] ss:$0 sm:$0xff]  ;;  %v554_v43 = vld [vmem:[%s1643_s27 + $0x18] sm:$0xff]  ;;  %v556_v58 = vld [vmem:[%s1643_s27 + $0x28] sm:$0xff] }
  0x1c   : > { %1267 = vmatmul.mubr.msk.bf16.vlgmr.msra.gmra.mxu0 %vm460_vm0, %v434_v14  ;;  %v561_v49 = vpack.c.bf16 %v554_v43, %v553_v42  ;;  %v555_v57 = vld [vmem:[%s1643_s27 + $0x20] sm:$0xff]  ;;  %v1404_v10 = vld [vmem:[%s1771_s6 + $0x18] sm:$0xff]   ;;  %v1405_v11 = vld [vmem:[%s1771_s6 + $0x10] sm:$0xff]  }
  0x1d   : > { %1270 = vmatprep.mubr.msk.bf16.mxu0 %vm460_vm0, %v435_v15  ;;  %663 = vmatpush1.bf16.msra.mxu1 %v1393_v6  ;;  %v563_v60 = vpack.c.bf16 %v556_v58, %v555_v57  ;;  %v1403_v9 = vld [vmem:[%s1771_s6 + $0x20] sm:$0xff]   ;;  %v1406_v12 = vld [vmem:[%s1771_s6 + $0x8] sm:$0xff]  }
  0x1e   : > { %664 = vmatprep.subr.bf16.mxu1 %v1500_v3  ;;  %1216 = vmatprep.mubr.msk.bf16.mxu1 %vm641_vm2, %v559_v27  ;;  %v1407_v13 = vld [vmem:[%s1771_s6] sm:$0xff]  }
  0x1f   : > { %1275 = vmatpush3.bf16.msra.mxu0 %v1400_v28  ;;  %v1206_v14 = vld [vmem:[%s1770_s5] ss:$0 sm:$0xff] }
  0x20   : > { %1276 = vmatprep.subr.bf16.mxu0 %v1401_v29 }
  0x21   : > { %665 = vmatpush1.bf16.msra.mxu1 %v1394_v17 }
  0x22   : > { %666 = vmatprep.subr.bf16.mxu1 %v1500_v3 }
  0x23   : > { %1277 = vmatpush3.bf16.msra.mxu0 %v1401_v29 }
  0x24   : > { %1271 = vmatmul.mubr.msk.bf16.gmra.mxu0 %vm460_vm0, %v436_v18  ;;  %1278 = vmatprep.subr.bf16.mxu0 %v1402_v30 }
  0x25   : > { %667 = vmatpush1.bf16.msra.mxu1 %v1395_v19 }
  0x26   : > { %668 = vmatprep.subr.bf16.mxu1 %v1500_v3 }
  0x27   : > { %1279 = vmatpush3.bf16.msra.mxu0 %v1402_v30 }
  0x28   : > { %1280 = vmatprep.subr.bf16.mxu0 %v1403_v9 }
  0x29   : > { %669 = vmatpush1.bf16.msra.mxu1 %v1396_v20 }
  0x2a   : > { %670 = vmatprep.subr.bf16.mxu1 %v1500_v3 }
  0x2b   : > { %1281 = vmatpush3.bf16.msra.mxu0 %v1403_v9 }
  0x2c   : > { %1282 = vmatprep.subr.bf16.mxu0 %v1404_v10 }
  0x2d   : > { %671 = vmatpush1.bf16.msra.mxu1 %v1397_v21 }
  0x2e   : > { %672 = vmatprep.subr.bf16.mxu1 %v1500_v3 }
  0x2f   : > { %1283 = vmatpush3.bf16.msra.mxu0 %v1404_v10 }
  0x30   : > { %1284 = vmatprep.subr.bf16.mxu0 %v1405_v11 }
  0x31   : > { %673 = vmatpush1.bf16.msra.mxu1 %v1398_v22 }
  0x32   : > { %688 = vmatprep.subr.bf16.mxu1 %v1500_v3  ;;  %v557_v3 = vld [vmem:[%s1643_s27 + $0x30] sm:$0xff]  ;;  %s1243_s27 = smul.u32 (%p1584_p4), 56, %s1572_s9 }
  0x33   : > { %v565_v4 = vpack.c.bf16 %v557_v3, %v557_v3  ;;  %1285 = vmatpush3.bf16.msra.mxu0 %v1405_v11 }
  0x34   : > { %1286 = vmatprep.subr.bf16.mxu0 %v1406_v12  ;;  %s1716_s30 = scalar_lea.vmem (%p1584_p4), %s1775_s10, %s1243_s27  }
  0x35   : > { %689 = vmatpush2.bf16.msra.mxu1 %v656_v24 }
  0x37   : > { %1287 = vmatpush3.bf16.msra.mxu0 %v1406_v12 }
  0x38   : > { %1288 = vmatprep.subr.bf16.mxu0 %v1407_v13 }
  0x3b   : > { %1289 = vmatpush3.bf16.msra.mxu0 %v1407_v13 }
  0xdc   : > { %v1268_v31 = vpop.f32.mrf.mxu0 }
  0xdd   : > { %v516_v45 = vadd.f32 %v1268_v31, %v1199_v32 }
  0xde   : > { %v507_v33 = vpop.f32.mrf.mxu0 }
  0xdf   : > { %v508_v34 = vadd.f32 %v1199_v32, %v507_v33  ;;  %v539_v53 = vmul.f32 0.01, %v516_v45 }
  0xe0   : > { %v1269_v35 = vpop.f32.mrf.mxu0 }
  0xe1   : > { %v537_v37 = vmul.f32 0.01, %v508_v34  ;;  %v519_v40 = vadd.f32 %v1269_v35, %v1199_v32  ;;  %v546_v59 = vmax.f32 %v516_v45, %v539_v53 }
  0xe2   : > { %v510_v36 = vpop.f32.mrf.mxu0 }
  0xe3   : > { %v511_v38 = vadd.f32 %v1199_v32, %v510_v36  ;;  %v544_v46 = vmax.f32 %v508_v34, %v537_v37  ;;  %v540_v50 = vmul.f32 0.01, %v519_v40 }
  0xe4   : > { %v1272_v39 = vpop.f32.mrf.mxu0 }
  0xe5   : > { %v538_v41 = vmul.f32 0.01, %v511_v38  ;;  %v547_v54 = vmax.f32 %v519_v40, %v540_v50  ;;  %v532_v0 = vadd.f32 %v1272_v39, %v1199_v32 }
  0xe6   : > { %v523_v44 = vpop.f32.mrf.mxu0 }
  0xe7   : > { %v545_v47 = vmax.f32 %v511_v38, %v538_v41  ;;  %v524_v55 = vadd.f32 %v1199_v32, %v523_v44  ;;  %v560_v63 = vpack.c.bf16 %v547_v54, %v546_v59  ;;  %v543_v5 = vmul.f32 0.01, %v532_v0 }
  0xe8   : > { %v1273_v48 = vpop.f32.mrf.mxu0 }
  0xe9   : > { %v558_v51 = vpack.c.bf16 %v545_v47, %v544_v46  ;;  %v541_v61 = vmul.f32 0.01, %v524_v55  ;;  %v550_v7 = vmax.f32 %v532_v0, %v543_v5 }
  0xea   : > { %v526_v52 = vpop.f32.mrf.mxu0 }
  0xeb   : > { %691 = vmatmul.mubr.bf16.vlgmr.msra.gmra.mxu1 %v558_v51  ;;  %v527_v56 = vadd.f32 %v1199_v32, %v526_v52  ;;  %v548_v1 = vmax.f32 %v524_v55, %v541_v61  ;;  %v564_v8 = vpack.c.bf16 %v550_v7, %v550_v7 }
  0xec   : > { %1217 = vmatprep.mubr.msk.bf16.mxu1 %vm641_vm2, %v561_v49 }
  0xed   : > { %v542_v62 = vmul.f32 0.01, %v527_v56 }
  0xef   : > { %v549_v2 = vmax.f32 %v527_v56, %v542_v62  ;;  %v1220_v56 = vld [vmem:[%s1772_s7] ss:$0 sm:$0xff] }
  0xf1   : > { %v562_v6 = vpack.c.bf16 %v549_v2, %v548_v1 }
  0xf3   : > { %699 = vmatmul.mubr.bf16.gmra.mxu1 %v560_v63  ;;  %v1229_v63 = vld [vmem:[%s1773_s8] ss:$0 sm:$0xff] }
  0xf4   : > { %1218 = vmatprep.mubr.msk.bf16.mxu1 %vm641_vm2, %v563_v60 }
  0xfb   : > { %707 = vmatmul.mubr.bf16.gmra.mxu1 %v562_v6 }
  0xfc   : > { %1219 = vmatprep.mubr.msk.bf16.mxu1 %vm641_vm2, %v565_v4 }
 0x103   : > { %715 = vmatmul.mubr.bf16.gmra.mxu1 %v564_v8 }
 0x1ab   : > { %v692_v15 = vpop.f32.mrf.mxu1 }
 0x1ac   : > { %v693_v16 = vadd.f32 %v1206_v14, %v692_v15 }
 0x1ad   : > { %v694_v17 = vpop.f32.mrf.mxu1 }
 0x1ae   : > { %v722_v19 = vmul.f32 0.01, %v693_v16 }
 0x1af   : > { %v695_v18 = vpop.f32.mrf.mxu1 }
 0x1b0   : > { %v696_v20 = vadd.f32 %v1206_v14, %v695_v18  ;;  %v729_v24 = vmax.f32 %v693_v16, %v722_v19 }
 0x1b1   : > { %v697_v21 = vpop.f32.mrf.mxu1 }
 0x1b2   : > { %v723_v22 = vmul.f32 0.01, %v696_v20 }
 0x1b3   : > { %v700_v23 = vpop.f32.mrf.mxu1 }
 0x1b4   : > { %v730_v25 = vmax.f32 %v696_v20, %v723_v22  ;;  %v701_v26 = vadd.f32 %v1206_v14, %v700_v23 }
 0x1b5   : > { %v702_v27 = vpop.f32.mrf.mxu1 }
 0x1b6   : > { %v736_v28 = vpack.c.bf16 %v730_v25, %v729_v24  ;;  %v724_v30 = vmul.f32 0.01, %v701_v26 }
 0x1b7   : > { %v703_v29 = vpop.f32.mrf.mxu1 }
 0x1b8   : > { %v704_v31 = vadd.f32 %v1206_v14, %v703_v29  ;;  %1290 = vmatprep.mubr.bf16.mxu0 %v736_v28  ;;  %v731_v35 = vmax.f32 %v701_v26, %v724_v30  ;;  %v1230_v30 = vld [vmem:[#allocation2] ss:$0 sm:$0xff] }
 0x1b9   : > { %v705_v32 = vpop.f32.mrf.mxu1 }
 0x1ba   : > { %v725_v33 = vmul.f32 0.01, %v704_v31 }
 0x1bb   : > { %v708_v34 = vpop.f32.mrf.mxu1 }
 0x1bc   : > { %v732_v36 = vmax.f32 %v704_v31, %v725_v33  ;;  %v709_v37 = vadd.f32 %v1206_v14, %v708_v34 }
 0x1bd   : > { %v710_v38 = vpop.f32.mrf.mxu1 }
 0x1be   : > { %v737_v39 = vpack.c.bf16 %v732_v36, %v731_v35  ;;  %v726_v41 = vmul.f32 0.01, %v709_v37 }
 0x1bf   : > { %v711_v40 = vpop.f32.mrf.mxu1 }
 0x1c0   : > { %v712_v42 = vadd.f32 %v1206_v14, %v711_v40  ;;  %1291 = vmatmul.mubr.bf16.vlgmr.msra.gmra.mxu0 %v737_v39  ;;  %v733_v46 = vmax.f32 %v709_v37, %v726_v41 }
 0x1c1   : > { %v713_v43 = vpop.f32.mrf.mxu1 }
 0x1c2   : > { %v727_v44 = vmul.f32 0.01, %v712_v42 }
 0x1c3   : > { %v716_v45 = vpop.f32.mrf.mxu1 }
 0x1c4   : > { %v734_v47 = vmax.f32 %v712_v42, %v727_v44  ;;  %v717_v48 = vadd.f32 %v1206_v14, %v716_v45 }
 0x1c5   : > { %v718_v49 = vpop.f32.mrf.mxu1 }
 0x1c6   : > { %v728_v50 = vmul.f32 0.01, %v717_v48  ;;  %v738_v51 = vpack.c.bf16 %v734_v47, %v733_v46 }
 0x1c7   : > { %v719_v52 = vpop.f32.mrf.mxu1 }
 0x1c8   : > { %v735_v53 = vmax.f32 %v717_v48, %v728_v50  ;;  %1294 = vmatprep.mubr.bf16.mxu0 %v738_v51 }
 0x1c9   : > { %v720_v54 = vpop.f32.mrf.mxu1 }
 0x1ca   : > { %v739_v55 = vpack.c.bf16 %v735_v53, %v735_v53 }
 0x1cc   : > { %1295 = vmatmul.mubr.bf16.gmra.mxu0 %v739_v55 }
 0x280   : > { %v1292_v57 = vpop.f32.mrf.mxu0 }
 0x281   : > { %v854_v58 = vadd.f32 %v1292_v57, %v1220_v56 }
 0x282   : > { %v845_v59 = vpop.f32.mrf.mxu0 }
 0x283   : > { %v877_v60 = vmul.f32 0.01, %v854_v58  ;;  %v846_v61 = vadd.f32 %v1220_v56, %v845_v59 }
 0x284   : > { %v1293_v62 = vpop.f32.mrf.mxu0 }
 0x285   : > { %v875_v0 = vmul.f32 0.01, %v846_v61  ;;  %v857_v1 = vadd.f32 %v1293_v62, %v1220_v56  ;;  %v884_v2 = vmax.f32 %v854_v58, %v877_v60 }
 0x286   : > { %v848_v3 = vpop.f32.mrf.mxu0 }
 0x287   : > { %v878_v4 = vmul.f32 0.01, %v857_v1  ;;  %v849_v5 = vadd.f32 %v1220_v56, %v848_v3  ;;  %v898_v6 = vmul.f32 %v1229_v63, %v884_v2  ;;  %v882_v7 = vmax.f32 %v846_v61, %v875_v0 }
 0x289   : > { %v885_v8 = vmax.f32 %v857_v1, %v878_v4  ;;  %v876_v9 = vmul.f32 0.01, %v849_v5  ;;  %907 = vadd.xlane.f32.xlu1 %v898_v6  ;;  %v896_v10 = vmul.f32 %v1229_v63, %v882_v7 }
 0x28b   : > { %v883_v11 = vmax.f32 %v849_v5, %v876_v9  ;;  %903 = vadd.xlane.f32.xlu0 %v896_v10  ;;  %v899_v12 = vmul.f32 %v1229_v63, %v885_v8 }
 0x28c   : > { %v1296_v13 = vpop.f32.mrf.mxu0 }
 0x28d   : > { %v870_v14 = vadd.f32 %v1296_v13, %v1220_v56  ;;  %909 = vadd.xlane.f32.xlu1 %v899_v12  ;;  %v897_v15 = vmul.f32 %v1229_v63, %v883_v11 }
 0x28e   : > { %v861_v16 = vpop.f32.mrf.mxu0 }
 0x28f   : > { %v862_v17 = vadd.f32 %v1220_v56, %v861_v16  ;;  %905 = vadd.xlane.f32.xlu0 %v897_v15  ;;  %v881_v19 = vmul.f32 0.01, %v870_v14 }
 0x290   : > { %v1297_v18 = vpop.f32.mrf.mxu0 }
 0x291   : > { %v879_v20 = vmul.f32 0.01, %v862_v17  ;;  %v888_v24 = vmax.f32 %v870_v14, %v881_v19 }
 0x292   : > { %v864_v21 = vpop.f32.mrf.mxu0 }
 0x293   : > { %v886_v22 = vmax.f32 %v862_v17, %v879_v20  ;;  %v865_v23 = vadd.f32 %v1220_v56, %v864_v21  ;;  %v902_v29 = vmul.f32 %v1229_v63, %v888_v24 }
 0x295   : > { %v880_v25 = vmul.f32 0.01, %v865_v23  ;;  %v900_v26 = vmul.f32 %v1229_v63, %v886_v22 }
 0x297   : > { %v887_v27 = vmax.f32 %v865_v23, %v880_v25  ;;  %911 = vadd.xlane.f32.xlu0 %v900_v26 }
 0x299   : > { %v901_v28 = vmul.f32 %v1229_v63, %v887_v27 }
 0x29b   : > { %913 = vadd.xlane.f32.xlu1 %v901_v28  ;;  %915 = vadd.xlane.f32.xlu0 %v902_v29 }
 0x312   : > { %v908_v31 = vpop.xlane.xlu1 %907 }
 0x313   : > { %v926_v32 = vadd.f32 %v1230_v30, %v908_v31 }
 0x314   : > { %v904_v33 = vpop.xlane.xlu0 %903 }
 0x315   : > { %934 = vst.msk [vmem:[%s1693_s26 + $0x10] sm:$0xff] %vm931_vm3, %v926_v32  ;;  %v924_v34 = vadd.f32 %v1230_v30, %v904_v33 }
 0x316   : > { %v910_v35 = vpop.xlane.xlu1 %909 }
 0x317   : > { %932 = vst.msk [vmem:[%s1693_s26] sm:$0xff] %vm931_vm3, %v924_v34  ;;  %v927_v36 = vadd.f32 %v1230_v30, %v910_v35 }
 0x318   : > { %v906_v37 = vpop.xlane.xlu0 %905 }
 0x319   : > { %935 = vst.msk [vmem:[%s1693_s26 + $0x18] sm:$0xff] %vm931_vm3, %v927_v36  ;;  %v925_v38 = vadd.f32 %v1230_v30, %v906_v37 }
 0x31b   : > { %933 = vst.msk [vmem:[%s1693_s26 + $0x8] sm:$0xff] %vm931_vm3, %v925_v38 }
 0x320   : > { %v912_v39 = vpop.xlane.xlu0 %911 }
 0x321   : > { %v928_v40 = vadd.f32 %v1230_v30, %v912_v39 }
 0x323   : > { %936 = vst.msk [vmem:[%s1693_s26 + $0x20] sm:$0xff] %vm931_vm3, %v928_v40  ;;  %945 = sbr.rel (!%p1584_p4) target bundleno = 861 (0x35d), region = 64 }
 0x324   : > { %v914_v41 = vpop.xlane.xlu1 %913  ;;  %v916_v42 = vpop.xlane.xlu0 %915 }
 0x325   : > { %v929_v43 = vadd.f32 %v1230_v30, %v914_v41  ;;  %v930_v44 = vadd.f32 %v1230_v30, %v916_v42 }
 0x327   : > { %937 = vst.msk [vmem:[%s1693_s26 + $0x28] sm:$0xff] %vm931_vm3, %v929_v43  ;;  %938 = vst.msk [vmem:[%s1693_s26 + $0x30] sm:$0xff] %vm931_vm3, %v930_v44 }
 0x328   : > { %s1784_s15 = smov (!%p948_p8, %s947_s15), 7 }
 0x329   : > { %s1231_s11 = sshll.u32 %s1784_s15, 7 }
 0x32a   : > { %p1234_p9 = scmp.eq.s32.totalorder %s1231_s11, 0 }
 0x32b   : > { %1408 = sdivrem.u32 (!%p1234_p9), %s1784_s15, 7 }
 0x32c   : > { %956 = sbr.rel (%p1234_p9) target bundleno = 861 (0x35d), region = 68 }
 0x334   : > { %s1722_s22 = spop.drf %1408 }
 0x335   : > { %p1235_p10 = scmp.le.s32.totalorder %s1722_s22, 0 }
 0x336   : > { %s1777_s9 = smov (!%p1235_p10), %s1716_s30  ;;  %s1778_s25 = smov (!%p1235_p10), %s1693_s26 }
 0x337   : > { %1143 = sbr.rel (%p1235_p10) target bundleno = 836 (0x344), region = 147  ;;  %s1731_s13 = smov (!%p1235_p10), 0  }
 0x338   : > { %s1733_s12 = smov (!%p1235_p10), 0  }
 0x33c LB: >> { %v1033_v45 = vld [vmem:[%s1474_s25] sm:$0xff]  ;;  %v1035_v46 = vld [vmem:[%s1474_s25 + $0x8] sm:$0xff]  ;;  %v1037_v47 = vld [vmem:[%s1474_s25 + $0x10] sm:$0xff]  ;;  %s1047_s14 = sadd.s32 1, %s1478_s13  ;;  %s1027_s12 = sadd.s32 1, %s1482_s12   ;;  %s1482_s12 = sphi %s1733_s12, %s1027_s12   ;;  %s1478_s13 = sphi %s1731_s13, %s1779_s13   ;;  %s1474_s25 = sphi %s1778_s25, %s1052_s25   ;;  %s1470_s9 = sphi %s1777_s9, %s1053_s9  }
 0x33d   : >> { %1034 = vst [vmem:[%s1470_s9] sm:$0xff] %v1033_v45  ;;  %1036 = vst [vmem:[%s1470_s9 + $0x8] sm:$0xff] %v1035_v46  ;;  %v1039_v48 = vld [vmem:[%s1474_s25 + $0x18] sm:$0xff]  ;;  %v1041_v49 = vld [vmem:[%s1474_s25 + $0x20] sm:$0xff]  ;;  %p1048_p11 = scmp.ge.s32.totalorder %s1047_s14, %s1722_s22  ;;  %p1026_p12 = scmp.ge.s32.totalorder %s1027_s12, %s1722_s22 }
 0x33e   : >> { %1038 = vst [vmem:[%s1470_s9 + $0x10] sm:$0xff] %v1037_v47  ;;  %v1043_v50 = vld [vmem:[%s1474_s25 + $0x28] sm:$0xff]  ;;  %1040 = vst [vmem:[%s1470_s9 + $0x18] sm:$0xff] %v1039_v48  ;;  %v1045_v51 = vld [vmem:[%s1474_s25 + $0x30] sm:$0xff] }
 0x33f   : >> { %1042 = vst [vmem:[%s1470_s9 + $0x20] sm:$0xff] %v1041_v49  ;;  %1044 = vst [vmem:[%s1470_s9 + $0x28] sm:$0xff] %v1043_v50  ;;  %s1786_s14 = smov (%p1048_p11, %s1047_s14), 0  ;;  %1029 = sbr.rel (!%p1026_p12) target bundleno = 828 (0x33c), region = 153 }
 0x340   : >> { %1046 = vst [vmem:[%s1470_s9 + $0x30] sm:$0xff] %v1045_v51  ;;  %s1050_s17 = smul.u32 56, %s1786_s14  ;;  %s1779_s13 = smov %s1786_s14 }
 0x342   : >> { %s1052_s25 = scalar_lea.vmem %s1693_s26, %s1050_s17 [#allocation3]   ;;  %s1053_s9 = scalar_lea.vmem %s1716_s30, %s1050_s17  }
 0x344 PF: > { %1410 = sdivrem.u32 %s1784_s15, 7 }
 0x345   : > { %s1236_s19 = smul.u32 56, %s1722_s22 }
 0x347   : > { %s1058_s20 = scalar_lea.vmem %s1693_s26, %s1236_s19 [#allocation3]   ;;  %s1060_s23 = scalar_lea.vmem %s1716_s30, %s1236_s19  }
 0x34d   : > { %s1411_s24 = spop.drf %1410 }
 0x34e   : > { %p1238_p13 = scmp.le.s32.totalorder %s1411_s24, 0 }
 0x34f   : > { %s1484_s27 = smov (!%p1238_p13), %s1060_s23   ;;  %s1488_s28 = smov (!%p1238_p13), %s1058_s20  }
 0x350   : > { %1157 = sbr.rel (%p1238_p13) target bundleno = 861 (0x35d), region = 158  ;;  %s1492_s29 = smov (!%p1238_p13), 0  }
 0x351   : > { %s1496_s11 = smov (!%p1238_p13), 0  }
 0x355 LB: >> { %v1070_v52 = vld [vmem:[%s1490_s28] sm:$0xff]  ;;  %s1072_s9 = sadd.s32 1, %s1494_s29  ;;  %s1064_s11 = sadd.s32 1, %s1498_s11   ;;  %s1498_s11 = sphi %s1496_s11, %s1064_s11   ;;  %s1494_s29 = sphi %s1492_s29, %s1493_s29   ;;  %s1490_s28 = sphi %s1488_s28, %s1077_s28   ;;  %s1486_s27 = sphi %s1484_s27, %s1078_s27  }
 0x356   : >> { %1071 = vst [vmem:[%s1486_s27] sm:$0xff] %v1070_v52  ;;  %p1073_p0 = scmp.ge.s32.totalorder %s1072_s9, %s1411_s24  ;;  %p1063_p1 = scmp.ge.s32.totalorder %s1064_s11, %s1411_s24 }
 0x358   : >> { %s1788_s9 = smov (%p1073_p0, %s1072_s9), 0  ;;  %1066 = sbr.rel (!%p1063_p1) target bundleno = 853 (0x355), region = 164 }
 0x359   : >> { %s1239_s26 = sshll.u32 %s1788_s9, 3  ;;  %s1493_s29 = smov %s1788_s9  }
 0x35a   : >> { %s1077_s28 = scalar_lea.vmem %s1058_s20, %s1239_s26 [#allocation3]   ;;  %s1078_s27 = scalar_lea.vmem %s1060_s23, %s1239_s26  }
 0x35d PF: > { %p19_p2 = scmp.ge.s32.totalorder %s1574_s18, 4   ;;  %s1780_s15 = smov %s1462_s16 }
 0x35e   : > { %s1781_s16 = smov %s1582_s21  ;;  %s1782_s17 = smov %s1574_s18 }
 0x35f   :  { %21 = sbr.rel (!%p19_p2) target bundleno = 5 (0x5), region = 175 }

</bundles_post_ra>
